<compile_context>
chip_gen: v6e
topology: v6e:2x2x1
jax: 0.10.0
libtpu: 0.0.40
codegen_flags: <defaults>
</compile_context>

<pallas_src>
import math
import functools

import jax
import jax.numpy as jnp
from jax.experimental import pallas as pl
from jax.experimental.pallas import tpu as pltpu

EPS = 1e-5        # PyTorch LayerNorm default eps
NEG_INF = -1e9    # masked_fill value used in the reference MHA


# ------------------------------ tiling helper -------------------------------

def _pick_tile(dim, target, unit):
    """Largest multiple of `unit` <= target that divides dim, else full dim."""
    if dim <= target:
        return dim
    t = (target // unit) * unit
    while t >= unit:
        if dim % t == 0:
            return t
        t -= unit
    return dim


# ----------------------------- Pallas kernels ------------------------------

def _ln_linear_kernel(x_ref, g_ref, b_ref, w_ref, bias_ref, o_ref):
    """Fused LayerNorm(x) @ W + bias.  x tile [tm, D], W tile [D, tn] (bf16)."""
    x = x_ref[...]
    mean = jnp.mean(x, axis=-1, keepdims=True)
    var = jnp.mean((x - mean) ** 2, axis=-1, keepdims=True)
    xn = (x - mean) * jax.lax.rsqrt(var + EPS) * g_ref[...] + b_ref[...]
    o_ref[...] = (
        jnp.dot(xn.astype(jnp.bfloat16), w_ref[...],
                preferred_element_type=jnp.float32)
        + bias_ref[...]
    )


def ln_linear(x2d, gamma, beta, w, bias):
    """LayerNorm then Linear.  x2d: [M, D] f32, w: [D, N] bf16 -> [M, N] f32."""
    M, D = x2d.shape
    N = w.shape[1]
    tm = _pick_tile(M, 256, 8)
    tn = _pick_tile(N, 512, 128)
    grid = (M // tm, N // tn)
    return pl.pallas_call(
        _ln_linear_kernel,
        grid=grid,
        out_shape=jax.ShapeDtypeStruct((M, N), jnp.float32),
        in_specs=[
            pl.BlockSpec((tm, D), lambda i, j: (i, 0)),
            pl.BlockSpec((1, D), lambda i, j: (0, 0)),
            pl.BlockSpec((1, D), lambda i, j: (0, 0)),
            pl.BlockSpec((D, tn), lambda i, j: (0, j)),
            pl.BlockSpec((1, tn), lambda i, j: (0, j)),
        ],
        out_specs=pl.BlockSpec((tm, tn), lambda i, j: (i, j)),
        compiler_params=pltpu.CompilerParams(
            dimension_semantics=("parallel", "parallel")),
    )(x2d, gamma.reshape(1, D), beta.reshape(1, D), w, bias.reshape(1, N))


def _linear_kernel(x_ref, w_ref, bias_ref, o_ref, acc_ref):
    @pl.when(pl.program_id(2) == 0)
    def _():
        acc_ref[...] = jnp.zeros_like(acc_ref)
    acc_ref[...] += jnp.dot(x_ref[...].astype(jnp.bfloat16), w_ref[...],
                            preferred_element_type=jnp.float32)

    @pl.when(pl.program_id(2) == pl.num_programs(2) - 1)
    def _():
        o_ref[...] = acc_ref[...] + bias_ref[...]


def _linear_res_kernel(x_ref, w_ref, bias_ref, r_ref, o_ref, acc_ref):
    @pl.when(pl.program_id(2) == 0)
    def _():
        acc_ref[...] = jnp.zeros_like(acc_ref)
    acc_ref[...] += jnp.dot(x_ref[...].astype(jnp.bfloat16), w_ref[...],
                            preferred_element_type=jnp.float32)

    @pl.when(pl.program_id(2) == pl.num_programs(2) - 1)
    def _():
        # residual add fused into the projection finalize (saves one HBM pass)
        o_ref[...] = acc_ref[...] + bias_ref[...] + r_ref[...]


def linear(x2d, w, bias, residual=None):
    """Tiled (M, N, K) matmul + bias (+ optional fused residual add)."""
    M, K = x2d.shape
    N = w.shape[1]
    tm = _pick_tile(M, 256, 8)
    tn = _pick_tile(N, 256, 128)
    tk = _pick_tile(K, 512, 128)
    grid = (M // tm, N // tn, K // tk)
    in_specs = [
        pl.BlockSpec((tm, tk), lambda i, j, k: (i, k)),
        pl.BlockSpec((tk, tn), lambda i, j, k: (k, j)),
        pl.BlockSpec((1, tn), lambda i, j, k: (0, j)),
    ]
    args = [x2d, w, bias.reshape(1, N)]
    kern = _linear_kernel
    if residual is not None:
        in_specs.append(pl.BlockSpec((tm, tn), lambda i, j, k: (i, j)))
        args.append(residual)
        kern = _linear_res_kernel
    return pl.pallas_call(
        kern,
        grid=grid,
        out_shape=jax.ShapeDtypeStruct((M, N), jnp.float32),
        in_specs=in_specs,
        out_specs=pl.BlockSpec((tm, tn), lambda i, j, k: (i, j)),
        scratch_shapes=[pltpu.VMEM((tm, tn), jnp.float32)],
        compiler_params=pltpu.CompilerParams(
            dimension_semantics=("parallel", "parallel", "arbitrary")),
    )(*args)


def _ffn_kernel(x_ref, g_ref, b_ref, w1_ref, b1_ref, w2_ref, b2_ref, o_ref):
    """Fused sublayer: out = x + W2 @ relu(W1 @ LN(x) + b1) + b2."""
    x = x_ref[...]
    mean = jnp.mean(x, axis=-1, keepdims=True)
    var = jnp.mean((x - mean) ** 2, axis=-1, keepdims=True)
    xn = (x - mean) * jax.lax.rsqrt(var + EPS) * g_ref[...] + b_ref[...]
    h = jnp.dot(xn.astype(jnp.bfloat16), w1_ref[...],
                preferred_element_type=jnp.float32) + b1_ref[...]
    h = jnp.maximum(h, 0.0)  # ReLU
    y = jnp.dot(h.astype(jnp.bfloat16), w2_ref[...],
                preferred_element_type=jnp.float32) + b2_ref[...]
    o_ref[...] = x + y       # pre-norm residual


def feed_forward_block(x2d, gamma, beta, w1, b1, w2, b2):
    """LN -> Linear -> ReLU -> Linear -> +residual, M-tiled (hidden stays in VMEM)."""
    M, D = x2d.shape
    Dff = w1.shape[1]
    tm = _pick_tile(M, 128, 8)
    return pl.pallas_call(
        _ffn_kernel,
        grid=(M // tm,),
        out_shape=jax.ShapeDtypeStruct((M, D), jnp.float32),
        in_specs=[
            pl.BlockSpec((tm, D), lambda i: (i, 0)),
            pl.BlockSpec((1, D), lambda i: (0, 0)),
            pl.BlockSpec((1, D), lambda i: (0, 0)),
            pl.BlockSpec((D, Dff), lambda i: (0, 0)),
            pl.BlockSpec((1, Dff), lambda i: (0, 0)),
            pl.BlockSpec((Dff, D), lambda i: (0, 0)),
            pl.BlockSpec((1, D), lambda i: (0, 0)),
        ],
        out_specs=pl.BlockSpec((tm, D), lambda i: (i, 0)),
        compiler_params=pltpu.CompilerParams(dimension_semantics=("parallel",)),
    )(x2d, gamma.reshape(1, D), beta.reshape(1, D),
      w1, b1.reshape(1, Dff), w2, b2.reshape(1, D))


def _attn_kernel(q_ref, k_ref, v_ref, m_ref, o_ref, *rest, scale, with_probs):
    """All heads of one batch element per grid step."""
    q = q_ref[0]          # [H, Tq, dk]
    k = k_ref[0]          # [H, Tk, dk]
    v = v_ref[0]          # [H, Tk, dk]
    mask = m_ref[0]       # [Tq, Tk]
    s = jnp.einsum('hqd,hkd->hqk',
                   q.astype(jnp.bfloat16), k.astype(jnp.bfloat16),
                   preferred_element_type=jnp.float32) * scale
    s = jnp.where(mask[None, :, :] == 0.0, NEG_INF, s)
    s_max = jnp.max(s, axis=-1, keepdims=True)
    e = jnp.exp(s - s_max)
    denom = jnp.sum(e, axis=-1, keepdims=True)
    p = e * pl.reciprocal(denom, approx=True)
    o_ref[0] = jnp.einsum('hqk,hkd->hqd',
                          p.astype(jnp.bfloat16), v.astype(jnp.bfloat16),
                          preferred_element_type=jnp.float32)
    if with_probs:
        rest[0][0] = p


def attention(q, k, v, mask, *, with_probs):
    """q: [B,H,Tq,dk], k/v: [B,H,Tk,dk], mask: [B,Tq,Tk].

    Returns (out [B,H,Tq,dk], probs [B,H,Tq,Tk] or None).
    The probability tensor is only materialized when requested (last layer).
    """
    B, H, Tq, dk = q.shape
    Tk = k.shape[2]
    scale = 1.0 / math.sqrt(dk)
    kern = functools.partial(_attn_kernel, scale=scale, with_probs=with_probs)

    o_shape = jax.ShapeDtypeStruct((B, H, Tq, dk), jnp.float32)
    o_spec = pl.BlockSpec((1, H, Tq, dk), lambda b: (b, 0, 0, 0))
    if with_probs:
        out_shape = (o_shape, jax.ShapeDtypeStruct((B, H, Tq, Tk), jnp.float32))
        out_specs = (o_spec, pl.BlockSpec((1, H, Tq, Tk), lambda b: (b, 0, 0, 0)))
    else:
        out_shape = o_shape
        out_specs = o_spec

    res = pl.pallas_call(
        kern,
        grid=(B,),
        out_shape=out_shape,
        in_specs=[
            pl.BlockSpec((1, H, Tq, dk), lambda b: (b, 0, 0, 0)),
            pl.BlockSpec((1, H, Tk, dk), lambda b: (b, 0, 0, 0)),
            pl.BlockSpec((1, H, Tk, dk), lambda b: (b, 0, 0, 0)),
            pl.BlockSpec((1, Tq, Tk), lambda b: (b, 0, 0)),
        ],
        out_specs=out_specs,
        compiler_params=pltpu.CompilerParams(dimension_semantics=("parallel",)),
    )(q, k, v, mask)

    if with_probs:
        return res[0], res[1]
    return res, None


# ------------------------------ model wiring -------------------------------

def decoder_layer(p, trg, memory, src_mask, trg_mask, heads, want_attn):
    B, T, D = trg.shape
    dk = D // heads
    M = B * T
    trg2d = trg.reshape(M, D)

    # ---- self-attention sublayer: LN+QKV fused, residual fused into out-proj
    qkv = ln_linear(trg2d, p["norm_g"], p["norm_b"], p["sa_wqkv"], p["sa_bqkv"])
    qkv = qkv.reshape(B, T, 3, heads, dk).transpose(2, 0, 3, 1, 4)  # [3,B,H,T,dk]
    sa_out, _ = attention(qkv[0], qkv[1], qkv[2], trg_mask, with_probs=False)
    sa_out = sa_out.transpose(0, 2, 1, 3).reshape(M, D)
    trg2d = linear(sa_out, p["sa_wo"], p["sa_bo"], residual=trg2d)

    # ---- encoder-attention sublayer: LN+Q fused, combined KV projection
    Bm, Tk, _ = memory.shape
    q = ln_linear(trg2d, p["norm_g"], p["norm_b"], p["ea_wq"], p["ea_bq"])
    kv = linear(memory.reshape(Bm * Tk, D), p["ea_wkv"], p["ea_bkv"])
    q = q.reshape(B, T, heads, dk).transpose(0, 2, 1, 3)            # [B,H,T,dk]
    kv = kv.reshape(Bm, Tk, 2, heads, dk).transpose(2, 0, 3, 1, 4)  # [2,B,H,Tk,dk]
    ea_out, attn = attention(q, kv[0], kv[1], src_mask, with_probs=want_attn)
    ea_out = ea_out.transpose(0, 2, 1, 3).reshape(M, D)
    trg2d = linear(ea_out, p["ea_wo"], p["ea_bo"], residual=trg2d)

    # ---- feed-forward sublayer: single fused kernel (LN + FFN + residual)
    trg2d = feed_forward_block(trg2d, p["norm_g"], p["norm_b"],
                               p["ff_w1"], p["ff_b1"], p["ff_w2"], p["ff_b2"])
    return trg2d.reshape(B, T, D), attn


def decoder_forward(params, trg_tokens, memory, src_mask, trg_mask, heads):
    B, T = trg_tokens.shape
    D = params["tok_embed"].shape[1]
    # glue: embedding gather + scale + positional encoding add
    x = params["tok_embed"][trg_tokens] * math.sqrt(D)
    x = x + params["pe"][:T][None, :, :]
    attn = None
    n_layers = len(params["layers"])
    for li, lp in enumerate(params["layers"]):
        x, a = decoder_layer(lp, x, memory, src_mask, trg_mask, heads,
                             want_attn=(li == n_layers - 1))
        if a is not None:
            attn = a
    # final LayerNorm fused into output projection
    logits = ln_linear(x.reshape(B * T, D), params["norm_g"], params["norm_b"],
                       params["out_w"], params["out_b"]).reshape(B, T, -1)
    return logits, attn


# ------------------------ deterministic parameter init ----------------------

def init_params(key, vocab, d_model, n_layers, heads, d_ff, max_len):
    def dense(k, fan_in, fan_out):
        kw, kb = jax.random.split(k)
        bound = 1.0 / math.sqrt(fan_in)
        w = jax.random.uniform(kw, (fan_in, fan_out), jnp.float32, -bound, bound)
        b = jax.random.uniform(kb, (fan_out,), jnp.float32, -bound, bound)
        return w, b

    keys = jax.random.split(key, 3 + n_layers)
    params = {}
    params["tok_embed"] = jax.random.normal(keys[0], (vocab, d_model), jnp.float32)

    # sinusoidal positional encoding [max_len, d_model]
    pos = jnp.arange(max_len, dtype=jnp.float32)[:, None]
    div = jnp.exp(
        jnp.arange(0, d_model, 2, dtype=jnp.float32) * (-math.log(10000.0) / d_model)
    )
    pe = jnp.zeros((max_len, d_model), jnp.float32)
    pe = pe.at[:, 0::2].set(jnp.sin(pos * div))
    pe = pe.at[:, 1::2].set(jnp.cos(pos * div))
    params["pe"] = pe

    W = jnp.bfloat16  # MXU operand storage dtype (f32 accumulation in-kernel)

    layers = []
    for i in range(n_layers):
        lk = jax.random.split(keys[3 + i], 10)
        wq, bq = dense(lk[0], d_model, d_model)
        wk, bk = dense(lk[1], d_model, d_model)
        wv, bv = dense(lk[2], d_model, d_model)
        wo, bo = dense(lk[3], d_model, d_model)
        ewq, ebq = dense(lk[4], d_model, d_model)
        ewk, ebk = dense(lk[5], d_model, d_model)
        ewv, ebv = dense(lk[6], d_model, d_model)
        ewo, ebo = dense(lk[7], d_model, d_model)
        ff_w1, ff_b1 = dense(lk[8], d_model, d_ff)
        ff_w2, ff_b2 = dense(lk[9], d_ff, d_model)
        layers.append(dict(
            # single LayerNorm per layer, reused for all three pre-norms
            # (matches the reference DecoderLayer which has one self.norm)
            norm_g=jnp.ones((d_model,), jnp.float32),
            norm_b=jnp.zeros((d_model,), jnp.float32),
            sa_wqkv=jnp.concatenate([wq, wk, wv], axis=1).astype(W),
            sa_bqkv=jnp.concatenate([bq, bk, bv]),
            sa_wo=wo.astype(W), sa_bo=bo,
            ea_wq=ewq.astype(W), ea_bq=ebq,
            ea_wkv=jnp.concatenate([ewk, ewv], axis=1).astype(W),
            ea_bkv=jnp.concatenate([ebk, ebv]),
            ea_wo=ewo.astype(W), ea_bo=ebo,
            ff_w1=ff_w1.astype(W), ff_b1=ff_b1,
            ff_w2=ff_w2.astype(W), ff_b2=ff_b2,
        ))
    params["layers"] = layers
    params["norm_g"] = jnp.ones((d_model,), jnp.float32)
    params["norm_b"] = jnp.zeros((d_model,), jnp.float32)
    ow, ob = dense(keys[1], d_model, vocab)
    params["out_w"] = ow.astype(W)
    params["out_b"] = ob
    return params


# ---------------------------------- main ------------------------------------

if __name__ == "__main__":
    B, T_TRG, T_SRC = 2, 8, 8
    VOCAB, D_MODEL, N_LAYERS, HEADS, MAX_LEN = 64, 32, 2, 4, 16
    D_FF = 4 * D_MODEL  # FeedForward hidden size (synthetic init)

    key = jax.random.PRNGKey(0)
    kp, kt, km = jax.random.split(key, 3)
    params = init_params(kp, VOCAB, D_MODEL, N_LAYERS, HEADS, D_FF, MAX_LEN)

    trg = jax.random.randint(kt, (B, T_TRG), 0, VOCAB, dtype=jnp.int32)
    memory = jax.random.normal(km, (B, T_SRC, D_MODEL), jnp.float32)

    # masks broadcast to [B, Tq, Tk]; 1 = attend, 0 = masked
    causal = jnp.tril(jnp.ones((T_TRG, T_TRG), jnp.float32))
    trg_mask = jnp.tile(causal[None], (B, 1, 1))
    src_mask = jnp.ones((B, T_TRG, T_SRC), jnp.float32)

    logits, attn = decoder_forward(params, trg, memory, src_mask, trg_mask, HEADS)
    jax.block_until_ready((logits, attn))

    assert logits.shape == (B, T_TRG, VOCAB), logits.shape
    assert attn.shape == (B, HEADS, T_TRG, T_SRC), attn.shape
    assert jnp.all(jnp.isfinite(logits))
    assert jnp.all(jnp.isfinite(attn))
    print("KERNEL_OK")
</pallas_src>

<mosaic_0001>
module attributes {stable_mosaic.version = 11 : i64} {
  func.func @_ln_linear_kernel(%arg0: i32, %arg1: i32, %arg2: memref<16x32xf32, #tpu.memory_space<vmem>>, %arg3: memref<1x32xf32, #tpu.memory_space<vmem>>, %arg4: memref<1x32xf32, #tpu.memory_space<vmem>>, %arg5: memref<32x96xbf16, #tpu.memory_space<vmem>>, %arg6: memref<1x96xf32, #tpu.memory_space<vmem>>, %arg7: memref<16x96xf32, #tpu.memory_space<vmem>>) attributes {dimension_semantics = [#tpu.dimension_semantics<parallel>, #tpu.dimension_semantics<parallel>], iteration_bounds = array<i64: 1, 1>, scalar_prefetch = 0 : i64, scratch_operands = 0 : i64, tpu.core_type = #tpu.core_type<tc>, window_params = [{transform_indices = @transform_0, window_bounds = array<i64: 16, 32>}, {pipeline_mode = #tpu.pipeline_mode<synchronous>, transform_indices = @transform_1, window_bounds = array<i64: 1, 32>}, {pipeline_mode = #tpu.pipeline_mode<synchronous>, transform_indices = @transform_2, window_bounds = array<i64: 1, 32>}, {transform_indices = @transform_3, window_bounds = array<i64: 32, 96>}, {transform_indices = @transform_4, window_bounds = array<i64: 1, 96>}, {transform_indices = @transform_5, window_bounds = array<i64: 16, 96>}]} {
    %c0 = arith.constant 0 : index
    %c0_0 = arith.constant 0 : index
    %0 = vector.load %arg2[%c0, %c0_0] : memref<16x32xf32, #tpu.memory_space<vmem>>, vector<16x32xf32>
    %cst = arith.constant dense<0.000000e+00> : vector<16xf32>
    %1 = vector.multi_reduction <add>, %0, %cst [1] : vector<16x32xf32> to vector<16xf32>
    %2 = vector.shape_cast %1 : vector<16xf32> to vector<16x1xf32>
    %cst_1 = arith.constant 3.200000e+01 : f32
    %3 = vector.broadcast %cst_1 : f32 to vector<16x1xf32>
    %4 = arith.divf %2, %3 : vector<16x1xf32>
    %5 = vector.broadcast %4 : vector<16x1xf32> to vector<16x32xf32>
    %6 = arith.subf %0, %5 : vector<16x32xf32>
    %7 = arith.mulf %6, %6 : vector<16x32xf32>
    %cst_2 = arith.constant dense<0.000000e+00> : vector<16xf32>
    %8 = vector.multi_reduction <add>, %7, %cst_2 [1] : vector<16x32xf32> to vector<16xf32>
    %9 = vector.shape_cast %8 : vector<16xf32> to vector<16x1xf32>
    %cst_3 = arith.constant 3.200000e+01 : f32
    %10 = vector.broadcast %cst_3 : f32 to vector<16x1xf32>
    %11 = arith.divf %9, %10 : vector<16x1xf32>
    %12 = vector.broadcast %4 : vector<16x1xf32> to vector<16x32xf32>
    %13 = arith.subf %0, %12 : vector<16x32xf32>
    %cst_4 = arith.constant 9.99999974E-6 : f32
    %14 = vector.broadcast %cst_4 : f32 to vector<16x1xf32>
    %15 = arith.addf %11, %14 : vector<16x1xf32>
    %16 = math.rsqrt %15 : vector<16x1xf32>
    %17 = vector.broadcast %16 : vector<16x1xf32> to vector<16x32xf32>
    %18 = arith.mulf %13, %17 : vector<16x32xf32>
    %c0_5 = arith.constant 0 : index
    %c0_6 = arith.constant 0 : index
    %19 = vector.load %arg3[%c0_5, %c0_6] : memref<1x32xf32, #tpu.memory_space<vmem>>, vector<1x32xf32>
    %20 = vector.broadcast %19 : vector<1x32xf32> to vector<16x32xf32>
    %21 = arith.mulf %18, %20 : vector<16x32xf32>
    %c0_7 = arith.constant 0 : index
    %c0_8 = arith.constant 0 : index
    %22 = vector.load %arg4[%c0_7, %c0_8] : memref<1x32xf32, #tpu.memory_space<vmem>>, vector<1x32xf32>
    %23 = vector.broadcast %22 : vector<1x32xf32> to vector<16x32xf32>
    %24 = arith.addf %21, %23 : vector<16x32xf32>
    %25 = arith.truncf %24 : vector<16x32xf32> to vector<16x32xbf16>
    %c0_9 = arith.constant 0 : index
    %c0_10 = arith.constant 0 : index
    %26 = vector.load %arg5[%c0_9, %c0_10] : memref<32x96xbf16, #tpu.memory_space<vmem>>, vector<32x96xbf16>
    %cst_11 = arith.constant dense<0.000000e+00> : vector<16x96xf32>
    %27 = tpu.matmul %25, %26, %cst_11 {dimension_numbers = #tpu.dot_dimension_numbers<[1], [0], [0], [1], [0, 0, 1, 1], [], []>} : vector<16x32xbf16>, vector<32x96xbf16>, vector<16x96xf32> -> vector<16x96xf32>
    %c0_12 = arith.constant 0 : index
    %c0_13 = arith.constant 0 : index
    %28 = vector.load %arg6[%c0_12, %c0_13] : memref<1x96xf32, #tpu.memory_space<vmem>>, vector<1x96xf32>
    %29 = vector.broadcast %28 : vector<1x96xf32> to vector<16x96xf32>
    %30 = arith.addf %27, %29 : vector<16x96xf32>
    %c0_14 = arith.constant 0 : index
    %c0_15 = arith.constant 0 : index
    %31 = vector.load %arg7[%c0_14, %c0_15] : memref<16x96xf32, #tpu.memory_space<vmem>>, vector<16x96xf32>
    tpu.vector_store %arg7[%c0_14, %c0_15], %30 {strides = array<i32>} : memref<16x96xf32, #tpu.memory_space<vmem>>, vector<16x96xf32>,
    return
  }
  func.func @transform_0(%arg0: i32, %arg1: i32) -> (i32, i32) {
    %c0_i32 = arith.constant 0 : i32
    %c0_i32_0 = arith.constant 0 : i32
    return %arg0, %c0_i32 : i32, i32
  }
  func.func @transform_1(%arg0: i32, %arg1: i32) -> (i32, i32) {
    %c0_i32 = arith.constant 0 : i32
    %c0_i32_0 = arith.constant 0 : i32
    %c0_i32_1 = arith.constant 0 : i32
    return %c0_i32, %c0_i32_0 : i32, i32
  }
  func.func @transform_2(%arg0: i32, %arg1: i32) -> (i32, i32) {
    %c0_i32 = arith.constant 0 : i32
    %c0_i32_0 = arith.constant 0 : i32
    %c0_i32_1 = arith.constant 0 : i32
    return %c0_i32, %c0_i32_0 : i32, i32
  }
  func.func @transform_3(%arg0: i32, %arg1: i32) -> (i32, i32) {
    %c0_i32 = arith.constant 0 : i32
    %c0_i32_0 = arith.constant 0 : i32
    return %c0_i32, %arg1 : i32, i32
  }
  func.func @transform_4(%arg0: i32, %arg1: i32) -> (i32, i32) {
    %c0_i32 = arith.constant 0 : i32
    %c0_i32_0 = arith.constant 0 : i32
    return %c0_i32, %arg1 : i32, i32
  }
  func.func @transform_5(%arg0: i32, %arg1: i32) -> (i32, i32) {
    %c0_i32 = arith.constant 0 : i32
    return %arg0, %arg1 : i32, i32
  }
}

</mosaic_0001>

<bundles_post_ra>
// kernel: tpu_custom_call.1
= control target key start
LH: loop header
LB: loop body
LE: loop exit
PB: predicated region body
PF: predicated region fallthrough
CT: control target
= control target key end

     0   :  { %10 = vsyncpa [#allocation3], 0  ;;  %s353_s0 = inlined_call_operand.hbm [shape: f32[16,32], index: 0, kind: input, shape index: {}]   ;;  %s354_s1 = inlined_call_operand.vmem [shape: f32[1,32], index: 1, kind: input, shape index: {}]   ;;  %s355_s2 = inlined_call_operand.vmem [shape: f32[1,32], index: 2, kind: input, shape index: {}]   ;;  %s356_s3 = inlined_call_operand.hbm [shape: bf16[32,96], index: 3, kind: input, shape index: {}]   ;;  %s357_s4 = inlined_call_operand.vmem [shape: f32[1,96], index: 4, kind: input, shape index: {}]   ;;  %s358_s5 = inlined_call_operand.hbm [shape: f32[16,96], index: 5, kind: output, shape index: {}]  }
   0x1   :  { %11 = vsyncpa [#allocation6], 0 }
   0x2   :  { %12 = vsyncpa [#allocation4], 0  ;;  %s285_s18 = smov [#allocation2]  }
   0x3   :  { %s18_s19 = sshll.u32 %s285_s18, 4  ;;  %s19_s19 = int_to_ptr.vmem [resolvable:$true] %s18_s19 }
   0x4   :  { %s227_s20 = scalar_lea.vmem %s19_s19, 256  ;;  %p232_p1 = scmp.lt.s32.totalorder %s19_s19, %s19_s19 }
   0x5   :  { %p228_p0 = scmp.ne.s32.totalorder %s19_s19, %s227_s20  ;;  %p233_p2 = scmp.lt.s32.totalorder %s227_s20, %s227_s20 }
   0x7   :  { %p234_p3 = por %p233_p2, %p232_p1 }
   0x9   :  { %p235_p4 = pnand %p234_p3, %p228_p0 }
   0xb   :  { %238 = shalt.err (!%p235_p4)
}
   0xc   :  { %s286_s21 = smov 128   ;;  %s287_s22 = smov 8  }
   0xd   :  { %24 = dma.hbm_to_vmem [thread:$0]  %s353_s0, 256, %s19_s19, [#allocation3], %s286_s21, %s286_s21, %s287_s22  }
   0xe   :  { %s288_s25 = smov [#allocation5]  }
   0xf   :  { %s34_s26 = sshll.u32 %s288_s25, 4  ;;  %s35_s26 = int_to_ptr.vmem [resolvable:$true] %s34_s26 }
  0x10   :  { %s247_s27 = scalar_lea.vmem %s35_s26, 256  ;;  %p252_p6 = scmp.lt.s32.totalorder %s35_s26, %s35_s26 }
  0x11   :  { %p248_p5 = scmp.ne.s32.totalorder %s35_s26, %s247_s27  ;;  %p253_p7 = scmp.lt.s32.totalorder %s247_s27, %s247_s27 }
  0x13   :  { %p254_p8 = por %p253_p7, %p252_p6 }
  0x15   :  { %p255_p9 = pnand %p254_p8, %p248_p5 }
  0x17   :  { %258 = shalt.err (!%p255_p9)
}
  0x18   :  { %s289_s28 = smov 64   ;;  %s290_s29 = smov 4  }
  0x19   :  { %40 = dma.hbm_to_vmem [thread:$0]  %s356_s3, 256, %s35_s26, [#allocation6], %s289_s28, %s289_s28, %s290_s29  }
  0x1a   :  { %279 = dma.done.wait [#allocation3], 256  }
  0x1b   :  { %280 = vsyncadd [#allocation3], 4294967040 }
  0x1c   :  { %281 = dma.done.wait [#allocation6], 256  }
  0x1d   :  { %282 = vsyncadd [#allocation6], 4294967040  ;;  %vm52_vm0 = vcmask 261120   ;;  %v50_v0 = vld [vmem:[#allocation2] sm:$0xff]  ;;  %v51_v1 = vld [vmem:[#allocation2 + $0x8] sm:$0xff]  ;;  %v291_v15 = vmov 0.0  }
  0x1e   :  { %v53_v2 = vsel %vm52_vm0, %v50_v0, 0.0  ;;  %v56_v3 = vsel %vm52_vm0, %v51_v1, 0.0  ;;  %v213_v14 = vld [vmem:[#allocation5 + $0x8] sm:$0xff]   ;;  %196 = vmatprep.subr.bf16.mxu0 %v291_v15  ;;  %vm292_vm1 = vmmov 0   ;;  %v214_v16 = vld [vmem:[#allocation5] sm:$0xff]   ;;  %vm166_vm2 = vcmask 785408  }
  0x1f   :  { %54 = vadd.xlane.f32.xlu0 %v53_v2  ;;  %200 = vmatprep.mubr.msk.bf16.mxu0 %vm292_vm1, %v291_v15  ;;  %v187_v25 = vld [vmem:[%s354_s1] ss:$0 sm:$0xff]  ;;  %s293_s1 = smov [#allocation7]  }
  0x20   :  { %197 = vmatpush3.bf16.msra.mxu0 %v213_v14  ;;  %v188_v29 = vld [vmem:[%s355_s2] ss:$0 sm:$0xff]  ;;  %s174_s11 = sshll.u32 %s293_s1, 4  ;;  %s175_s11 = int_to_ptr.vmem [resolvable:$true] %s174_s11 }
  0x21   :  { %198 = vmatprep.subr.bf16.mxu0 %v291_v15  ;;  %v189_v34 = vld [vmem:[%s357_s4] ss:$0 sm:$0xff]  ;;  %s259_s2 = scalar_lea.vmem %s175_s11, 256  ;;  %p264_p11 = scmp.lt.s32.totalorder %s175_s11, %s175_s11 }
  0x22   :  { %p260_p10 = scmp.ne.s32.totalorder %s175_s11, %s259_s2  ;;  %p265_p12 = scmp.lt.s32.totalorder %s259_s2, %s259_s2 }
  0x23   :  { %57 = vadd.xlane.f32.xlu0 %v56_v3 }
  0x24   :  { %199 = vmatpush3.bf16.msra.mxu0 %v214_v16  ;;  %p266_p13 = por %p265_p12, %p264_p11 }
  0x26   :  { %p267_p0 = pnand %p266_p13, %p260_p10 }
  0xa8   :  { %v55_v4 = vpop.xlane.xlu0 %54 }
  0xa9   :  { %v60_v5 = vmul.f32 0.03125, %v55_v4 }
  0xab   :  { %v62_v6 = vsub.f32 %v50_v0, %v60_v5 }
  0xac   :  { %v58_v7 = vpop.xlane.xlu0 %57 }
  0xad   :  { %v61_v8 = vmul.f32 0.03125, %v58_v7  ;;  %v64_v9 = vmul.f32 %v62_v6, %v62_v6 }
  0xaf   :  { %v63_v10 = vsub.f32 %v51_v1, %v61_v8  ;;  %v66_v11 = vsel %vm52_vm0, %v64_v9, 0.0 }
  0xb0   :  { %67 = vadd.xlane.f32.xlu1 %v66_v11 }
  0xb1   :  { %v65_v12 = vmul.f32 %v63_v10, %v63_v10 }
  0xb3   :  { %v69_v13 = vsel %vm52_vm0, %v65_v12, 0.0 }
  0xb4   :  { %70 = vadd.xlane.f32.xlu1 %v69_v13 }
 0x139   :  { %v68_v17 = vpop.xlane.xlu1 %67 }
 0x13a   :  { %v72_v18 = vmul.f32 0.03125, %v68_v17 }
 0x13c   :  { %v74_v19 = vadd.f32 1e-05, %v72_v18 }
 0x13d   :  { %v71_v20 = vpop.xlane.xlu1 %70 }
 0x13e   :  { %215 = vrsqrt.f32 %v74_v19  ;;  %v73_v21 = vmul.f32 0.03125, %v71_v20 }
 0x140   :  { %v75_v22 = vadd.f32 1e-05, %v73_v21 }
 0x142   :  { %217 = vrsqrt.f32 %v75_v22 }
 0x14b   :  { %v216_v23 = vpop.eup %215 }
 0x14c   :  { %v78_v24 = vmul.f32 %v216_v23, %v62_v6 }
 0x14e   :  { %v87_v28 = vmul.f32 %v187_v25, %v78_v24 }
 0x14f   :  { %v218_v26 = vpop.eup %217 }
 0x150   :  { %v79_v27 = vmul.f32 %v218_v26, %v63_v10  ;;  %v96_v31 = vadd.f32 %v188_v29, %v87_v28 }
 0x152   :  { %v88_v30 = vmul.f32 %v187_v25, %v79_v27 }
 0x154   :  { %v97_v32 = vadd.f32 %v188_v29, %v88_v30 }
 0x156   :  { %v98_v33 = vpack.c.bf16 %v97_v32, %v96_v31 }
 0x158   :  { %201 = vmatmul.mubr.msk.bf16.vlgmr.msra.gmra.mxu0 %vm52_vm0, %v98_v33 }
 0x218   :  { %v159_v35 = vpop.f32.mrf.mxu0 }
 0x219   :  { %v160_v36 = vadd.f32 %v189_v34, %v159_v35 }
 0x21a   :  { %v202_v37 = vpop.f32.mrf.mxu0 }
 0x21b   :  { %167 = vst.msk [vmem:[#allocation7] sm:$0xff] %vm166_vm2, %v160_v36 }
 0x21c   :  { %v162_v38 = vpop.f32.mrf.mxu0 }
 0x21d   :  { %v163_v39 = vadd.f32 %v189_v34, %v162_v38 }
 0x21e   :  { %v203_v40 = vpop.f32.mrf.mxu0 }
 0x21f   :  { %168 = vst.msk [vmem:[#allocation7 + $0x8] sm:$0xff] %vm166_vm2, %v163_v39 }
 0x220   :  { %270 = shalt.err (!%p267_p0)
}
 0x221   :  { %180 = dma.vmem_to_hbm [thread:$0]  %s175_s11, 256, %s358_s5, [#allocation4], %s286_s21, %s286_s21, %s287_s22  }
 0x222   :  { %283 = dma.done.wait [#allocation4], 256  }
 0x223   :  { %284 = vsyncadd [#allocation4], 4294967040 }
 0x224   :  { %184 = vsyncpa [#allocation3], 1 }
 0x225   :  { %185 = vsyncpa [#allocation6], 1 }
 0x226   :  { %186 = vsyncpa [#allocation4], 1 }

</bundles_post_ra>
